<compile_context>
chip_gen: v6e
topology: v6e:2x2x1
jax: 0.10.0
libtpu: 0.0.40
codegen_flags: <defaults>
</compile_context>

<pallas_src>
import jax
import jax.numpy as jnp
from jax.experimental import pallas as pl
from jax.experimental.pallas import tpu as pltpu


_LANES = 1024          # lane-dense minor axis (multiple of 128)
_MAX_TILE_ROWS = 512   # (512, 1024) f32 tile = 2 MiB per pipeline buffer
_VMEM_LIMIT = 32 << 20  # explicit scoped-VMEM request; safe on v5e/v6e/v7x


def _stats_kernel(x_ref, sum_ref, sumsq_ref):
    """Pass 1: accumulate per-lane sum and sum-of-squares in f32."""
    @pl.when(pl.program_id(0) == 0)
    def _():
        sum_ref[...] = jnp.zeros_like(sum_ref)
        sumsq_ref[...] = jnp.zeros_like(sumsq_ref)

    x = x_ref[...].astype(jnp.float32)   # upcast inside kernel (bf16 I/O stays bf16)
    sum_ref[...] += jnp.sum(x, axis=0, keepdims=True)
    sumsq_ref[...] += jnp.sum(x * x, axis=0, keepdims=True)


def _apply_kernel(sc_ref, x_ref, o_ref):
    """Pass 2: normalize + AEG flow, purely elementwise per tile."""
    # sc_ref: SMEM (8,) f32 = [mean, rstd, vx, 1+vy, wx, 1+wy, afactor, mfactor]
    mean = sc_ref[0]
    rstd = sc_ref[1]
    vx = sc_ref[2]
    one_p_vy = sc_ref[3]
    wx = sc_ref[4]
    one_p_wy = sc_ref[5]
    afactor = sc_ref[6]
    mfactor = sc_ref[7]

    x = x_ref[...].astype(jnp.float32)
    d = (x - mean) * rstd
    v = d * one_p_vy + vx
    w = d * one_p_wy + wx
    dx = afactor * (v * jax.nn.sigmoid(w))   # torch sum over trailing singleton dim == identity
    dy = mfactor * jnp.tanh(d)
    o_ref[...] = (d * (1.0 + dy) + dx).astype(o_ref.dtype)


def _round_up(a, b):
    return -(-a // b) * b


def _layout(total):
    """Lane-dense (rows_padded, _LANES) factorization with evenly dividing row tiles."""
    rows = -(-total // _LANES)
    if rows <= _MAX_TILE_ROWS:
        # block == full array dims -> satisfies the (8,128) rule even if rows % 8 != 0
        return rows, rows, 1
    grid = -(-rows // _MAX_TILE_ROWS)
    tile_rows = _round_up(-(-rows // grid), 8)   # multiple of 8, <= 512, ~1.5% worst-case pad
    return grid * tile_rows, tile_rows, grid


@jax.jit
def opt_aeg_v3(x, params):
    """x: arbitrary-shaped float array with leading batch dim; params: (6,) f32
    = [vx, vy, wx, wy, afactor, mfactor]."""
    shape = x.shape
    total = x.size
    dtype = x.dtype
    itemsize = jnp.dtype(dtype).itemsize

    rows_padded, tile_rows, grid = _layout(total)
    padded_total = rows_padded * _LANES

    xf = x.reshape(-1)
    if padded_total != total:
        # Zero padding does not perturb sum / sum-of-squares; the true count
        # `total` is used for mean/var, and padded outputs are sliced off.
        xf = jnp.pad(xf, (0, padded_total - total))
    x2d = xf.reshape(rows_padded, _LANES)

    # ---------------- pass 1: fused global sum / sum-of-squares ----------------
    sums, sumsqs = pl.pallas_call(
        _stats_kernel,
        out_shape=(jax.ShapeDtypeStruct((1, _LANES), jnp.float32),
                   jax.ShapeDtypeStruct((1, _LANES), jnp.float32)),
        grid=(grid,),
        in_specs=[pl.BlockSpec((tile_rows, _LANES), lambda i: (i, 0))],
        out_specs=(pl.BlockSpec((1, _LANES), lambda i: (0, 0)),
                   pl.BlockSpec((1, _LANES), lambda i: (0, 0))),
        compiler_params=pltpu.CompilerParams(
            dimension_semantics=("arbitrary",),
            vmem_limit_bytes=_VMEM_LIMIT),
        cost_estimate=pl.CostEstimate(
            flops=3 * padded_total,
            transcendentals=0,
            bytes_accessed=padded_total * itemsize + 2 * _LANES * 4),
    )(x2d)

    # ------------- tiny scalar epilogue (hoisted out of the tile loop) ---------
    # Fused into the same jit as the pallas_calls -> one device dispatch overall.
    n = jnp.float32(total)
    total_sum = jnp.sum(sums)
    total_sumsq = jnp.sum(sumsqs)
    mean = total_sum / n
    # torch .std() default is unbiased (ddof=1); no epsilon -> constant input
    # gives NaN, matching torch. Fused E[x^2]-mean^2 keeps HBM traffic to 2 passes.
    var = (total_sumsq - n * mean * mean) / (n - 1.0)
    rstd = jax.lax.rsqrt(var)

    p = params.astype(jnp.float32)
    scalars = jnp.stack([mean, rstd,
                         p[0], 1.0 + p[1],
                         p[2], 1.0 + p[3],
                         p[4], p[5]]).astype(jnp.float32)

    # ---------------- pass 2: normalize + flow, tile-parallel ------------------
    out2d = pl.pallas_call(
        _apply_kernel,
        out_shape=jax.ShapeDtypeStruct((rows_padded, _LANES), dtype),
        grid=(grid,),
        in_specs=[pl.BlockSpec(memory_space=pltpu.SMEM),              # 8 scalars
                  pl.BlockSpec((tile_rows, _LANES), lambda i: (i, 0))],
        out_specs=pl.BlockSpec((tile_rows, _LANES), lambda i: (i, 0)),
        compiler_params=pltpu.CompilerParams(
            dimension_semantics=("parallel",),
            vmem_limit_bytes=_VMEM_LIMIT),
        cost_estimate=pl.CostEstimate(
            flops=12 * padded_total,
            transcendentals=2 * padded_total,
            bytes_accessed=2 * padded_total * itemsize + 8 * 4),
    )(scalars, x2d)

    out = out2d.reshape(-1)
    if padded_total != total:
        out = out[:total]
    return out.reshape(shape)


def _reference(x, params):
    """Pure-JAX reference mirroring the PyTorch forward."""
    vx, vy, wx, wy, afactor, mfactor = [params[i] for i in range(6)]
    shape = x.shape
    b = shape[0]
    d = x.reshape(b, -1).astype(jnp.float32)
    d = d - jnp.mean(d)
    d = d / jnp.std(d, ddof=1)
    v = d * (1.0 + vy) + vx
    w = d * (1.0 + wy) + wx
    dx = afactor * (v * jax.nn.sigmoid(w))
    dy = mfactor * jnp.tanh(d)
    out = d * (1.0 + dy) + dx
    return out.reshape(shape).astype(x.dtype)


if __name__ == "__main__":
    # Deterministic parameter init, matching OptAEGV3.__init__:
    #   vx=0, vy=1, wx=0, wy=1, afactor=0, mfactor=1
    params = jnp.array([0.0, 1.0, 0.0, 1.0, 0.0, 1.0], dtype=jnp.float32)

    # Small NCHW-like input consistent with a conv-style feature map.
    key = jax.random.PRNGKey(0)
    x = jax.random.normal(key, (2, 4, 16, 16), dtype=jnp.float32)

    out = jax.block_until_ready(opt_aeg_v3(x, params))
    ref = _reference(x, params)
    assert out.shape == x.shape
    assert jnp.allclose(out, ref, atol=1e-4, rtol=1e-4), "mismatch vs reference"

    # Exercise the padded (non-multiple-of-1024) path as well.
    x2 = jax.random.normal(jax.random.PRNGKey(0), (2, 3, 5, 7), dtype=jnp.float32)
    out2 = jax.block_until_ready(opt_aeg_v3(x2, params))
    ref2 = _reference(x2, params)
    assert out2.shape == x2.shape
    assert jnp.allclose(out2, ref2, atol=1e-4, rtol=1e-4), "mismatch vs reference (padded path)"

    # Exercise the multi-tile (grid > 1) accumulator path.
    x3 = jax.random.normal(jax.random.PRNGKey(0), (8, 8, 128, 128), dtype=jnp.float32)
    out3 = jax.block_until_ready(opt_aeg_v3(x3, params))
    ref3 = _reference(x3, params)
    assert out3.shape == x3.shape
    assert jnp.allclose(out3, ref3, atol=1e-3, rtol=1e-3), "mismatch vs reference (tiled path)"

    print("KERNEL_OK")
</pallas_src>

<mosaic_0001>
module attributes {stable_mosaic.version = 11 : i64} {
  func.func @_stats_kernel(%arg0: i32, %arg1: memref<2x1024xf32, #tpu.memory_space<vmem>>, %arg2: memref<1x1024xf32, #tpu.memory_space<vmem>>, %arg3: memref<1x1024xf32, #tpu.memory_space<vmem>>) attributes {dimension_semantics = [#tpu.dimension_semantics<arbitrary>], iteration_bounds = array<i64: 1>, scalar_prefetch = 0 : i64, scratch_operands = 0 : i64, tpu.core_type = #tpu.core_type<tc>, window_params = [{transform_indices = @transform_0, window_bounds = array<i64: 2, 1024>}, {pipeline_mode = #tpu.pipeline_mode<synchronous>, transform_indices = @transform_1, window_bounds = array<i64: 1, 1024>}, {pipeline_mode = #tpu.pipeline_mode<synchronous>, transform_indices = @transform_2, window_bounds = array<i64: 1, 1024>}]} {
    %c0_i32 = arith.constant 0 : i32
    %0 = arith.cmpi eq, %arg0, %c0_i32 : i32
    %1 = arith.extui %0 : i1 to i32
    %c0_i32_0 = arith.constant 0 : i32
    %2 = arith.cmpi ne, %1, %c0_i32_0 : i32
    scf.if %2 {
      %cst_11 = arith.constant 0.000000e+00 : f32
      %15 = vector.broadcast %cst_11 : f32 to vector<1x1024xf32>
      %c0_12 = arith.constant 0 : index
      %c0_13 = arith.constant 0 : index
      %16 = vector.load %arg2[%c0_12, %c0_13] : memref<1x1024xf32, #tpu.memory_space<vmem>>, vector<1x1024xf32>
      tpu.vector_store %arg2[%c0_12, %c0_13], %15 {strides = array<i32>} : memref<1x1024xf32, #tpu.memory_space<vmem>>, vector<1x1024xf32>,
      %cst_14 = arith.constant 0.000000e+00 : f32
      %17 = vector.broadcast %cst_14 : f32 to vector<1x1024xf32>
      %c0_15 = arith.constant 0 : index
      %c0_16 = arith.constant 0 : index
      %18 = vector.load %arg3[%c0_15, %c0_16] : memref<1x1024xf32, #tpu.memory_space<vmem>>, vector<1x1024xf32>
      tpu.vector_store %arg3[%c0_15, %c0_16], %17 {strides = array<i32>} : memref<1x1024xf32, #tpu.memory_space<vmem>>, vector<1x1024xf32>,
    } else {
    }
    %c0 = arith.constant 0 : index
    %c0_1 = arith.constant 0 : index
    %3 = vector.load %arg1[%c0, %c0_1] : memref<2x1024xf32, #tpu.memory_space<vmem>>, vector<2x1024xf32>
    %c0_2 = arith.constant 0 : index
    %c0_3 = arith.constant 0 : index
    %4 = vector.load %arg2[%c0_2, %c0_3] : memref<1x1024xf32, #tpu.memory_space<vmem>>, vector<1x1024xf32>
    %cst = arith.constant dense<0.000000e+00> : vector<1024xf32>
    %5 = vector.multi_reduction <add>, %3, %cst [0] : vector<2x1024xf32> to vector<1024xf32>
    %6 = vector.shape_cast %5 : vector<1024xf32> to vector<1x1024xf32>
    %7 = arith.addf %4, %6 : vector<1x1024xf32>
    %c0_4 = arith.constant 0 : index
    %c0_5 = arith.constant 0 : index
    %8 = vector.load %arg2[%c0_4, %c0_5] : memref<1x1024xf32, #tpu.memory_space<vmem>>, vector<1x1024xf32>
    tpu.vector_store %arg2[%c0_4, %c0_5], %7 {strides = array<i32>} : memref<1x1024xf32, #tpu.memory_space<vmem>>, vector<1x1024xf32>,
    %c0_6 = arith.constant 0 : index
    %c0_7 = arith.constant 0 : index
    %9 = vector.load %arg3[%c0_6, %c0_7] : memref<1x1024xf32, #tpu.memory_space<vmem>>, vector<1x1024xf32>
    %10 = arith.mulf %3, %3 : vector<2x1024xf32>
    %cst_8 = arith.constant dense<0.000000e+00> : vector<1024xf32>
    %11 = vector.multi_reduction <add>, %10, %cst_8 [0] : vector<2x1024xf32> to vector<1024xf32>
    %12 = vector.shape_cast %11 : vector<1024xf32> to vector<1x1024xf32>
    %13 = arith.addf %9, %12 : vector<1x1024xf32>
    %c0_9 = arith.constant 0 : index
    %c0_10 = arith.constant 0 : index
    %14 = vector.load %arg3[%c0_9, %c0_10] : memref<1x1024xf32, #tpu.memory_space<vmem>>, vector<1x1024xf32>
    tpu.vector_store %arg3[%c0_9, %c0_10], %13 {strides = array<i32>} : memref<1x1024xf32, #tpu.memory_space<vmem>>, vector<1x1024xf32>,
    return
  }
  func.func @transform_0(%arg0: i32) -> (i32, i32) {
    %c0_i32 = arith.constant 0 : i32
    %c0_i32_0 = arith.constant 0 : i32
    return %arg0, %c0_i32 : i32, i32
  }
  func.func @transform_1(%arg0: i32) -> (i32, i32) {
    %c0_i32 = arith.constant 0 : i32
    %c0_i32_0 = arith.constant 0 : i32
    %c0_i32_1 = arith.constant 0 : i32
    return %c0_i32, %c0_i32_0 : i32, i32
  }
  func.func @transform_2(%arg0: i32) -> (i32, i32) {
    %c0_i32 = arith.constant 0 : i32
    %c0_i32_0 = arith.constant 0 : i32
    %c0_i32_1 = arith.constant 0 : i32
    return %c0_i32, %c0_i32_0 : i32, i32
  }
}

module attributes {stable_mosaic.version = 11 : i64} {
  func.func @_apply_kernel(%arg0: i32, %arg1: memref<8xf32, #tpu.memory_space<smem>>, %arg2: memref<2x1024xf32, #tpu.memory_space<vmem>>, %arg3: memref<2x1024xf32, #tpu.memory_space<vmem>>) attributes {dimension_semantics = [#tpu.dimension_semantics<parallel>], iteration_bounds = array<i64: 1>, scalar_prefetch = 0 : i64, scratch_operands = 0 : i64, tpu.core_type = #tpu.core_type<tc>, window_params = [{transform_indices = @transform_0, window_bounds = array<i64: 8>}, {transform_indices = @transform_1, window_bounds = array<i64: 2, 1024>}, {transform_indices = @transform_2, window_bounds = array<i64: 2, 1024>}]} {
    %c0 = arith.constant 0 : index
    %0 = memref.load %arg1[%c0] : memref<8xf32, #tpu.memory_space<smem>>
    %c1 = arith.constant 1 : index
    %1 = memref.load %arg1[%c1] : memref<8xf32, #tpu.memory_space<smem>>
    %c2 = arith.constant 2 : index
    %2 = memref.load %arg1[%c2] : memref<8xf32, #tpu.memory_space<smem>>
    %c3 = arith.constant 3 : index
    %3 = memref.load %arg1[%c3] : memref<8xf32, #tpu.memory_space<smem>>
    %c4 = arith.constant 4 : index
    %4 = memref.load %arg1[%c4] : memref<8xf32, #tpu.memory_space<smem>>
    %c5 = arith.constant 5 : index
    %5 = memref.load %arg1[%c5] : memref<8xf32, #tpu.memory_space<smem>>
    %c6 = arith.constant 6 : index
    %6 = memref.load %arg1[%c6] : memref<8xf32, #tpu.memory_space<smem>>
    %c7 = arith.constant 7 : index
    %7 = memref.load %arg1[%c7] : memref<8xf32, #tpu.memory_space<smem>>
    %c0_0 = arith.constant 0 : index
    %c0_1 = arith.constant 0 : index
    %8 = vector.load %arg2[%c0_0, %c0_1] : memref<2x1024xf32, #tpu.memory_space<vmem>>, vector<2x1024xf32>
    %9 = vector.broadcast %0 : f32 to vector<2x1024xf32>
    %10 = arith.subf %8, %9 : vector<2x1024xf32>
    %11 = vector.broadcast %1 : f32 to vector<2x1024xf32>
    %12 = arith.mulf %10, %11 : vector<2x1024xf32>
    %13 = vector.broadcast %3 : f32 to vector<2x1024xf32>
    %14 = arith.mulf %12, %13 : vector<2x1024xf32>
    %15 = vector.broadcast %2 : f32 to vector<2x1024xf32>
    %16 = arith.addf %14, %15 : vector<2x1024xf32>
    %17 = vector.broadcast %5 : f32 to vector<2x1024xf32>
    %18 = arith.mulf %12, %17 : vector<2x1024xf32>
    %19 = vector.broadcast %4 : f32 to vector<2x1024xf32>
    %20 = arith.addf %18, %19 : vector<2x1024xf32>
    %21 = arith.negf %20 : vector<2x1024xf32>
    %22 = math.exp %21 : vector<2x1024xf32>
    %cst = arith.constant 1.000000e+00 : f32
    %23 = vector.broadcast %cst : f32 to vector<2x1024xf32>
    %24 = arith.addf %23, %22 : vector<2x1024xf32>
    %25 = arith.divf %23, %24 : vector<2x1024xf32>
    %26 = arith.mulf %16, %25 : vector<2x1024xf32>
    %27 = vector.broadcast %6 : f32 to vector<2x1024xf32>
    %28 = arith.mulf %27, %26 : vector<2x1024xf32>
    %29 = math.tanh %12 : vector<2x1024xf32>
    %30 = vector.broadcast %7 : f32 to vector<2x1024xf32>
    %31 = arith.mulf %30, %29 : vector<2x1024xf32>
    %cst_2 = arith.constant 1.000000e+00 : f32
    %32 = vector.broadcast %cst_2 : f32 to vector<2x1024xf32>
    %33 = arith.addf %32, %31 : vector<2x1024xf32>
    %34 = arith.mulf %12, %33 : vector<2x1024xf32>
    %35 = arith.addf %34, %28 : vector<2x1024xf32>
    %c0_3 = arith.constant 0 : index
    %c0_4 = arith.constant 0 : index
    %36 = vector.load %arg3[%c0_3, %c0_4] : memref<2x1024xf32, #tpu.memory_space<vmem>>, vector<2x1024xf32>
    tpu.vector_store %arg3[%c0_3, %c0_4], %35 {strides = array<i32>} : memref<2x1024xf32, #tpu.memory_space<vmem>>, vector<2x1024xf32>,
    return
  }
  func.func @transform_0(%arg0: i32) -> i32 {
    %c0_i32 = arith.constant 0 : i32
    %c0_i32_0 = arith.constant 0 : i32
    return %c0_i32 : i32
  }
  func.func @transform_1(%arg0: i32) -> (i32, i32) {
    %c0_i32 = arith.constant 0 : i32
    %c0_i32_0 = arith.constant 0 : i32
    return %arg0, %c0_i32 : i32, i32
  }
  func.func @transform_2(%arg0: i32) -> (i32, i32) {
    %c0_i32 = arith.constant 0 : i32
    %c0_i32_0 = arith.constant 0 : i32
    return %arg0, %c0_i32 : i32, i32
  }
}

</mosaic_0001>

<bundles_post_ra>
// kernel: opt_aeg_v3.2
= control target key start
LH: loop header
LB: loop body
LE: loop exit
PB: predicated region body
PF: predicated region fallthrough
CT: control target
= control target key end

     0   :  { %v25_v0 = vlaneseq  ;;  %v356_v3 = vmov 1983009808   ;;  %v357_v7 = vmov 1966171168   ;;  %vm63_vm0 = vcmask 1041408   ;;  %s435_s0 = inlined_call_operand.vmem [shape: f32[2,1024], index: 0, kind: input, shape index: {}]   ;;  %s436_s1 = inlined_call_operand.vmem [shape: f32[1,1024], index: 1, kind: output, shape index: {0}]   ;;  %s437_s2 = inlined_call_operand.vmem [shape: f32[1,1024], index: 2, kind: output, shape index: {1}]  }
   0x1   :  { %v16_v1 = vld [vmem:[%s435_s0] sm:$0xff]  ;;  %v17_v2 = vld [vmem:[%s435_s0 + $0x8] sm:$0xff]  ;;  %v23_v4 = vunpack.c.l.s4 %v356_v3  ;;  %v133_v8 = vunpack.c.l.s4 %v357_v7 }
   0x2   :  { %v21_v5 = vcombine.high %v16_v1, %v16_v1  ;;  %v26_v6 = vshrl.u32 %v25_v0, 7  ;;  %v38_v10 = vcombine.high %v17_v2, %v17_v2  ;;  %v181_v11 = vmul.f32 %v16_v1, %v16_v1 }
   0x3   :  { %v24_v9 = vunpack.c.0.s8 %v23_v4  ;;  %v182_v12 = vmul.f32 %v17_v2, %v17_v2  ;;  %v134_v13 = vunpack.c.0.s8 %v133_v8 }
   0x4   :  { %v185_v15 = vcombine.high %v181_v11, %v181_v11 }
   0x5   :  { %v27_v14 = vsub.s32 %v24_v9, %v26_v6  ;;  %v202_v16 = vcombine.high %v182_v12, %v182_v12  ;;  %v379_v17 = vsub.s32 %v134_v13, %v26_v6 }
   0x7   :  { %v28_v18 = vrot.slane %v16_v1, %v27_v14  ;;  %v35_v19 = vrot.slane %v21_v5, %v27_v14  ;;  %v45_v20 = vrot.slane %v17_v2, %v27_v14  ;;  %v52_v21 = vrot.slane %v38_v10, %v27_v14 }
   0x8   :  { %v381_v22 = vrot.slane %v181_v11, %v27_v14  ;;  %v383_v23 = vrot.slane %v185_v15, %v27_v14  ;;  %v385_v24 = vrot.slane %v182_v12, %v27_v14  ;;  %v387_v25 = vrot.slane %v202_v16, %v27_v14 }
   0x9   :  { %v36_v26 = vcombine.high %v28_v18, %v28_v18  ;;  %v37_v27 = vcombine.high %v35_v19, %v35_v19  ;;  %v53_v28 = vcombine.high %v45_v20, %v45_v20  ;;  %v54_v29 = vcombine.high %v52_v21, %v52_v21 }
   0xa   :  { %v64_v30 = vsel %vm63_vm0, %v28_v18, 0.0  ;;  %v78_v31 = vsel %vm63_vm0, %v35_v19, 0.0  ;;  %v92_v32 = vsel %vm63_vm0, %v45_v20, 0.0  ;;  %v106_v33 = vsel %vm63_vm0, %v52_v21, 0.0 }
   0xb   :  { %v65_v34 = vrot.slane %v64_v30, 4  ;;  %v71_v35 = vsel %vm63_vm0, %v36_v26, 0.0  ;;  %v79_v36 = vrot.slane %v78_v31, 4  ;;  %v85_v37 = vsel %vm63_vm0, %v37_v27, 0.0 }
   0xc   :  { %v72_v38 = vrot.slane %v71_v35, 4  ;;  %v86_v39 = vrot.slane %v85_v37, 4  ;;  %v93_v40 = vrot.slane %v92_v32, 4  ;;  %v99_v41 = vsel %vm63_vm0, %v53_v28, 0.0 }
   0xd   :  { %v66_v42 = vadd.f32 %v65_v34, %v64_v30  ;;  %v80_v43 = vadd.f32 %v79_v36, %v78_v31  ;;  %v100_v44 = vrot.slane %v99_v41, 4  ;;  %v107_v45 = vrot.slane %v106_v33, 4 }
   0xe   :  { %v73_v46 = vadd.f32 %v72_v38, %v71_v35  ;;  %v87_v47 = vadd.f32 %v86_v39, %v85_v37  ;;  %v94_v48 = vadd.f32 %v93_v40, %v92_v32  ;;  %v113_v49 = vsel %vm63_vm0, %v54_v29, 0.0 }
   0xf   :  { %v67_v50 = vrot.slane %v66_v42, 2  ;;  %v81_v51 = vrot.slane %v80_v43, 2  ;;  %v101_v52 = vadd.f32 %v100_v44, %v99_v41  ;;  %v108_v53 = vadd.f32 %v107_v45, %v106_v33 }
  0x10   :  { %v74_v54 = vrot.slane %v73_v46, 2  ;;  %v88_v55 = vrot.slane %v87_v47, 2  ;;  %v95_v56 = vrot.slane %v94_v48, 2  ;;  %v114_v57 = vrot.slane %v113_v49, 4 }
  0x11   :  { %v68_v58 = vadd.f32 %v67_v50, %v66_v42  ;;  %v82_v59 = vadd.f32 %v81_v51, %v80_v43  ;;  %v102_v60 = vrot.slane %v101_v52, 2  ;;  %v109_v61 = vrot.slane %v108_v53, 2 }
  0x12   :  { %v75_v62 = vadd.f32 %v74_v54, %v73_v46  ;;  %v89_v63 = vadd.f32 %v88_v55, %v87_v47  ;;  %v96_v0 = vadd.f32 %v95_v56, %v94_v48  ;;  %v115_v1 = vadd.f32 %v114_v57, %v113_v49 }
  0x13   :  { %v69_v2 = vrot.slane %v68_v58, 1  ;;  %v83_v3 = vrot.slane %v82_v59, 1  ;;  %v103_v4 = vadd.f32 %v102_v60, %v101_v52  ;;  %v110_v5 = vadd.f32 %v109_v61, %v108_v53 }
  0x14   :  { %v76_v6 = vrot.slane %v75_v62, 1  ;;  %v90_v7 = vrot.slane %v89_v63, 1  ;;  %v97_v8 = vrot.slane %v96_v0, 1  ;;  %v116_v9 = vrot.slane %v115_v1, 2 }
  0x15   :  { %v70_v10 = vadd.f32 %v69_v2, %v68_v58  ;;  %v84_v11 = vadd.f32 %v83_v3, %v82_v59  ;;  %v104_v12 = vrot.slane %v103_v4, 1  ;;  %v111_v13 = vrot.slane %v110_v5, 1 }
  0x16   :  { %v77_v14 = vadd.f32 %v76_v6, %v75_v62  ;;  %v91_v15 = vadd.f32 %v90_v7, %v89_v63  ;;  %v98_v16 = vadd.f32 %v97_v8, %v96_v0  ;;  %v117_v18 = vadd.f32 %v116_v9, %v115_v1 }
  0x17   :  { %v105_v19 = vadd.f32 %v104_v12, %v103_v4  ;;  %v112_v20 = vadd.f32 %v111_v13, %v110_v5  ;;  %v200_v21 = vcombine.high %v381_v22, %v381_v22  ;;  %v201_v26 = vcombine.high %v383_v23, %v383_v23 }
  0x18   :  { %v118_v27 = vrot.slane %v117_v18, 1  ;;  %v128_v28 = vcombine.low %v70_v10, %v77_v14  ;;  %v129_v29 = vcombine.low %v84_v11, %v91_v15  ;;  %v217_v30 = vcombine.high %v385_v24, %v385_v24 }
  0x19   :  { %v130_v31 = vcombine.low %v98_v16, %v105_v19  ;;  %v218_v32 = vcombine.high %v387_v25, %v387_v25  ;;  %v227_v33 = vsel %vm63_vm0, %v381_v22, 0.0  ;;  %v234_v34 = vsel %vm63_vm0, %v200_v21, 0.0 }
  0x1a   :  { %v119_v35 = vadd.f32 %v118_v27, %v117_v18  ;;  %v138_v36 = vrot.slane %v128_v28, %v379_v17  ;;  %v145_v37 = vrot.slane %v129_v29, %v379_v17  ;;  %v228_v38 = vrot.slane %v227_v33, 4 }
  0x1b   :  { %v152_v39 = vrot.slane %v130_v31, %v379_v17  ;;  %v235_v40 = vrot.slane %v234_v34, 4  ;;  %v241_v41 = vsel %vm63_vm0, %v383_v23, 0.0  ;;  %v248_v42 = vsel %vm63_vm0, %v201_v26, 0.0 }
  0x1c   :  { %v131_v43 = vcombine.low %v112_v20, %v119_v35  ;;  %v160_v44 = vcombine.low %v138_v36, %v145_v37  ;;  %v229_v45 = vadd.f32 %v228_v38, %v227_v33  ;;  %v242_v22 = vrot.slane %v241_v41, 4 }
  0x1d   :  { %v236_v46 = vadd.f32 %v235_v40, %v234_v34  ;;  %v249_v47 = vrot.slane %v248_v42, 4  ;;  %v255_v48 = vsel %vm63_vm0, %v385_v24, 0.0  ;;  %v262_v49 = vsel %vm63_vm0, %v217_v30, 0.0 }
  0x1e   :  { %v159_v50 = vrot.slane %v131_v43, %v379_v17  ;;  %v168_v51 = vrot.slane %v160_v44, %v379_v17  ;;  %v230_v52 = vrot.slane %v229_v45, 2  ;;  %v243_v53 = vadd.f32 %v242_v22, %v241_v41 }
  0x1f   :  { %v237_v23 = vrot.slane %v236_v46, 2  ;;  %v250_v54 = vadd.f32 %v249_v47, %v248_v42  ;;  %v256_v55 = vrot.slane %v255_v48, 4  ;;  %v263_v56 = vrot.slane %v262_v49, 4 }
  0x20   :  { %v161_v57 = vcombine.low %v152_v39, %v159_v50  ;;  %v231_v58 = vadd.f32 %v230_v52, %v229_v45  ;;  %v244_v59 = vrot.slane %v243_v53, 2  ;;  %v269_v60 = vsel %vm63_vm0, %v387_v25, 0.0 }
  0x21   :  { %v238_v61 = vadd.f32 %v237_v23, %v236_v46  ;;  %v251_v24 = vrot.slane %v250_v54, 2  ;;  %v257_v62 = vadd.f32 %v256_v55, %v255_v48  ;;  %v264_v63 = vadd.f32 %v263_v56, %v262_v49 }
  0x22   :  { %v175_v0 = vrot.slane %v161_v57, %v379_v17  ;;  %v232_v1 = vrot.slane %v231_v58, 1  ;;  %v245_v2 = vadd.f32 %v244_v59, %v243_v53  ;;  %v270_v3 = vrot.slane %v269_v60, 4 }
  0x23   :  { %v239_v4 = vrot.slane %v238_v61, 1  ;;  %v252_v5 = vadd.f32 %v251_v24, %v250_v54  ;;  %v258_v6 = vrot.slane %v257_v62, 2  ;;  %v265_v7 = vrot.slane %v264_v63, 2 }
  0x24   :  { %v176_v8 = vcombine.low %v168_v51, %v175_v0  ;;  %v233_v9 = vadd.f32 %v232_v1, %v231_v58  ;;  %v246_v10 = vrot.slane %v245_v2, 1  ;;  %v271_v11 = vadd.f32 %v270_v3, %v269_v60 }
  0x25   :  { %v240_v12 = vadd.f32 %v239_v4, %v238_v61  ;;  %v253_v13 = vrot.slane %v252_v5, 1  ;;  %v259_v25 = vadd.f32 %v258_v6, %v257_v62  ;;  %v266_v14 = vadd.f32 %v265_v7, %v264_v63 }
  0x26   :  { %v247_v15 = vadd.f32 %v246_v10, %v245_v2  ;;  %v272_v16 = vrot.slane %v271_v11, 2  ;;  %v276_v18 = vsel %vm63_vm0, %v218_v32, 0.0  ;;  %179 = vst [vmem:[%s436_s1] sm:$0xff] %v176_v8 }
  0x27   :  { %v254_v19 = vadd.f32 %v253_v13, %v252_v5  ;;  %v260_v20 = vrot.slane %v259_v25, 1  ;;  %v267_v21 = vrot.slane %v266_v14, 1  ;;  %v277_v26 = vrot.slane %v276_v18, 4 }
  0x28   :  { %v273_v27 = vadd.f32 %v272_v16, %v271_v11  ;;  %v291_v30 = vcombine.low %v233_v9, %v240_v12 }
  0x29   :  { %v278_v28 = vadd.f32 %v277_v26, %v276_v18  ;;  %v261_v29 = vadd.f32 %v260_v20, %v259_v25  ;;  %v268_v31 = vadd.f32 %v267_v21, %v266_v14  ;;  %v292_v35 = vcombine.low %v247_v15, %v254_v19 }
  0x2a   :  { %v274_v33 = vrot.slane %v273_v27, 1  ;;  %v301_v37 = vrot.slane %v291_v30, %v379_v17 }
  0x2b   :  { %v279_v34 = vrot.slane %v278_v28, 2  ;;  %v293_v39 = vcombine.low %v261_v29, %v268_v31  ;;  %v308_v40 = vrot.slane %v292_v35, %v379_v17 }
  0x2c   :  { %v275_v32 = vadd.f32 %v274_v33, %v273_v27 }
  0x2d   :  { %v280_v36 = vadd.f32 %v279_v34, %v278_v28  ;;  %v315_v43 = vrot.slane %v293_v39, %v379_v17  ;;  %v323_v44 = vcombine.low %v301_v37, %v308_v40 }
  0x2f   :  { %v281_v38 = vrot.slane %v280_v36, 1  ;;  %v331_v46 = vrot.slane %v323_v44, %v379_v17 }
  0x31   :  { %v282_v41 = vadd.f32 %v281_v38, %v280_v36 }
  0x33   :  { %v294_v42 = vcombine.low %v275_v32, %v282_v41 }
  0x35   :  { %v322_v45 = vrot.slane %v294_v42, %v379_v17 }
  0x37   :  { %v324_v22 = vcombine.low %v315_v43, %v322_v45 }
  0x39   :  { %v338_v47 = vrot.slane %v324_v22, %v379_v17 }
  0x3b   :  { %v339_v48 = vcombine.low %v331_v46, %v338_v47 }
  0x3d   :  { %342 = vst [vmem:[%s437_s2] sm:$0xff] %v339_v48 }

// kernel: opt_aeg_v3.3
= control target key start
LH: loop header
LB: loop body
LE: loop exit
PB: predicated region body
PF: predicated region fallthrough
CT: control target
= control target key end

     0   :  { %7 = vsyncpa [#allocation3], 0  ;;  %s154_s0 = inlined_call_operand.vmem [shape: f32[8], index: 0, kind: input, shape index: {}]   ;;  %s155_s1 = inlined_call_operand.vmem [shape: f32[2,1024], index: 1, kind: input, shape index: {}]   ;;  %s156_s2 = inlined_call_operand.vmem [shape: f32[2,1024], index: 2, kind: output, shape index: {}]  }
   0x1   :  { %s14_s11 = sshll.u32 %s154_s0, 4  ;;  %s15_s11 = int_to_ptr.vmem [resolvable:$true] %s14_s11 }
   0x2   :  { %s109_s12 = scalar_lea.vmem %s15_s11, 16  ;;  %p114_p1 = scmp.lt.s32.totalorder %s15_s11, %s15_s11 }
   0x3   :  { %p110_p0 = scmp.ne.s32.totalorder %s15_s11, %s109_s12  ;;  %p115_p2 = scmp.lt.s32.totalorder %s109_s12, %s109_s12 }
   0x5   :  { %p116_p3 = por %p115_p2, %p114_p1 }
   0x7   :  { %p117_p4 = pnand %p116_p3, %p110_p0 }
   0x9   :  { %120 = shalt.err (!%p117_p4)
}
   0xa   :  { %s123_s13 = smov [#allocation2]  }
   0xb   :  { %17 = dma.vmem_to_smem %s15_s11, 16, %s123_s13, [#allocation3]  }
   0xc   :  { %121 = dma.done.wait [#allocation3], 16  }
   0xd   :  { %122 = vsyncadd [#allocation3], 4294967280 }
   0xe   :  { %23 = sfence }
   0xf   :  { %s24_s14 = sld [smem:[#allocation2]]  ;;  %v32_v0 = vld [vmem:[%s155_s1] sm:$0xff]  ;;  %v33_v1 = vld [vmem:[%s155_s1 + $0x8] sm:$0xff] }
  0x10   :  { %s87_s15 = sld [smem:[#allocation2 + $0x1]] }
  0x11   :  { %s90_s16 = sld [smem:[#allocation2 + $0x4]] }
  0x12   :  { %s91_s20 = sld [smem:[#allocation2 + $0x5]] }
  0x13   :  { %s89_s1 = sld [smem:[#allocation2 + $0x3]] }
  0x14   :  { %s93_s21 = sld [smem:[#allocation2 + $0x7]] }
  0x15   :  { %v34_v2 = vstv %s24_s14  ;;  %s88_s22 = sld [smem:[#allocation2 + $0x2]] }
  0x16   :  { %v35_v3 = vsub.f32 %v32_v0, %v34_v2  ;;  %v37_v4 = vstv %s87_s15  ;;  %v36_v5 = vsub.f32 %v33_v1, %v34_v2  ;;  %s92_s23 = sld [smem:[#allocation2 + $0x6]] }
  0x17   :  { %v49_v9 = vstv %s90_s16 }
  0x18   :  { %v38_v6 = vmul.f32 %v37_v4, %v35_v3  ;;  %v39_v7 = vmul.f32 %v37_v4, %v36_v5  ;;  %v46_v8 = vstv %s91_s20 }
  0x19   :  { %v40_v21 = vstv %s89_s1 }
  0x1a   :  { %v47_v10 = vmul.f32 %v46_v8, %v38_v6  ;;  %v48_v11 = vmul.f32 %v46_v8, %v39_v7  ;;  %v71_v22 = vstv %s93_s21  ;;  %v41_v24 = vmul.f32 %v40_v21, %v38_v6 }
  0x1b   :  { %v43_v26 = vstv %s88_s22  ;;  %v42_v27 = vmul.f32 %v40_v21, %v39_v7 }
  0x1c   :  { %v50_v12 = vadd.f32 %v49_v9, %v47_v10  ;;  %v51_v13 = vadd.f32 %v49_v9, %v48_v11  ;;  %v44_v29 = vadd.f32 %v43_v26, %v41_v24  ;;  %v66_v34 = vstv %s92_s23 }
  0x1d   :  { %v45_v31 = vadd.f32 %v43_v26, %v42_v27 }
  0x1e   :  { %v94_v14 = vmul.f32 -1.442695, %v50_v12  ;;  %v95_v15 = vmul.f32 -1.442695, %v51_v13 }
  0x20   :  { %97 = vpow2.f32 %v94_v14 }
  0x21   :  { %99 = vpow2.f32 %v95_v15 }
  0x22   :  { %101 = vtanh.f32 %v38_v6 }
  0x23   :  { %103 = vtanh.f32 %v39_v7 }
  0x2d   :  { %v98_v16 = vpop.eup %97 }
  0x2e   :  { %v100_v17 = vpop.eup %99  ;;  %v58_v18 = vadd.f32 1.0, %v98_v16 }
  0x2f   :  { %v59_v19 = vadd.f32 1.0, %v100_v17  ;;  %v102_v20 = vpop.eup %101 }
  0x30   :  { %105 = vrcp.f32 %v58_v18  ;;  %v104_v23 = vpop.eup %103  ;;  %v72_v25 = vmul.f32 %v102_v20, %v71_v22 }
  0x31   :  { %107 = vrcp.f32 %v59_v19  ;;  %v73_v28 = vmul.f32 %v104_v23, %v71_v22 }
  0x32   :  { %v74_v30 = vadd.f32 1.0, %v72_v25 }
  0x33   :  { %v75_v32 = vadd.f32 1.0, %v73_v28 }
  0x34   :  { %v76_v37 = vmul.f32 %v74_v30, %v38_v6 }
  0x35   :  { %v77_v39 = vmul.f32 %v75_v32, %v39_v7 }
  0x3d   :  { %v106_v33 = vpop.eup %105 }
  0x3e   :  { %v108_v35 = vpop.eup %107  ;;  %v64_v36 = vmul.f32 %v106_v33, %v44_v29 }
  0x3f   :  { %v65_v38 = vmul.f32 %v108_v35, %v45_v31 }
  0x40   :  { %v67_v40 = vmul.f32 %v66_v34, %v64_v36 }
  0x41   :  { %v68_v41 = vmul.f32 %v66_v34, %v65_v38 }
  0x42   :  { %v78_v42 = vadd.f32 %v76_v37, %v67_v40 }
  0x43   :  { %v79_v43 = vadd.f32 %v77_v39, %v68_v41 }
  0x44   :  { %80 = vst [vmem:[%s156_s2] sm:$0xff] %v78_v42 }
  0x45   :  { %81 = vst [vmem:[%s156_s2 + $0x8] sm:$0xff] %v79_v43 }
  0x46   :  { %86 = vsyncpa [#allocation3], 1 }

</bundles_post_ra>
